<compile_context>
chip_gen: v6e
topology: v6e:2x2x1
jax: 0.10.0
libtpu: 0.0.40
codegen_flags: <defaults>
</compile_context>

<pallas_src>
import functools
import math
from typing import Any, NamedTuple, Tuple

import jax
import jax.numpy as jnp
from jax.experimental import pallas as pl
from jax.experimental.pallas import tpu as pltpu


_LANE = 128    # TPU lane width: feature dims padded to a multiple of this
_SUBLANE = 8   # f32 sublane count: batch tiles are multiples of this


def _round_up(x, m):
    return ((x + m - 1) // m) * m


def _cdiv(a, b):
    return -(-a // b)


@functools.lru_cache(maxsize=1)
def _device_kind() -> str:
    try:
        return jax.devices()[0].device_kind.lower()
    except Exception:
        return ""


def _default_weight_dtype():
    # bf16 MXU operands on v6e / v7x (918+ TF/s bf16, halves weight DMA bytes);
    # f32 on v5e (review: keep the f32 elementwise path there, and the exact
    # f32 matmul is cheap at these sizes).
    kind = _device_kind()
    if any(tag in kind for tag in ("v6", "v7")):
        return jnp.bfloat16
    return jnp.float32


def _num_tensorcores() -> int:
    # v7x has 2 TensorCores per chip; v5e/v6e have 1.
    return 2 if "v7" in _device_kind() else 1


# ----------------------------------------------------------------------------
# Param preparation (runs ONCE at init, not per forward call)
# ----------------------------------------------------------------------------
class PreparedParams(NamedTuple):
    flat_wb: Tuple[jax.Array, ...]   # [w0, b0, w1, b1, ...] padded (+ cast)
    n_layers: int
    n_feature: int
    out_dim: int                     # real (unpadded) final output width
    widths: Tuple[int, ...]          # lane-padded output width per layer
    weight_dtype: Any


def prepare_params(params, n_feature, *, weight_dtype=None) -> PreparedParams:
    """Zero-pad weights/biases to lane-dense shapes ONCE and cache them.

    params: list of (w, b) with w of shape (in, out) (torch weight transposed)
            and b of shape (out,).

    Layer 0 keeps its real K (= n_feature) so x needs no feature padding.
    Layers >= 1 get zero rows over the padded input lanes, which exactly
    cancels the sigmoid(0) = 0.5 values living in padded activation lanes.
    Biases stay f32 (bias add + sigmoid are always done in f32).
    """
    if weight_dtype is None:
        weight_dtype = _default_weight_dtype()
    weight_dtype = jnp.dtype(weight_dtype)

    flat_wb = []
    widths = []
    in_dim = n_feature      # real input width of the current layer
    in_pad = n_feature      # padded input width of the current layer
    for (w, b) in params:
        assert w.shape[0] == in_dim, "layer input width mismatch"
        out_dim_l = w.shape[1]
        out_pad = _round_up(out_dim_l, _LANE)
        w_p = jnp.zeros((in_pad, out_pad), jnp.float32)
        w_p = w_p.at[: w.shape[0], : w.shape[1]].set(w.astype(jnp.float32))
        w_p = w_p.astype(weight_dtype)
        b_p = jnp.zeros((1, out_pad), jnp.float32)
        b_p = b_p.at[0, : b.shape[0]].set(b.astype(jnp.float32))
        flat_wb += [w_p, b_p]
        widths.append(out_pad)
        in_dim = out_dim_l
        in_pad = out_pad

    return PreparedParams(
        flat_wb=tuple(flat_wb),
        n_layers=len(params),
        n_feature=n_feature,
        out_dim=params[-1][0].shape[1],
        widths=tuple(widths),
        weight_dtype=weight_dtype,
    )


# ----------------------------------------------------------------------------
# Kernel body
# ----------------------------------------------------------------------------
def _mlp_kernel(*refs, n_layers, approx_recip):
    """refs = (x_ref, w0, b0, w1, b1, ..., w_{L-1}, b_{L-1}, o_ref)."""
    x_ref = refs[0]
    o_ref = refs[-1]
    wb = refs[1:-1]

    a = x_ref[...].astype(jnp.float32)
    for i in range(n_layers):
        w = wb[2 * i][...]
        b = wb[2 * i + 1][...]                   # (1, out_pad), broadcast add
        lhs = a if w.dtype == jnp.float32 else a.astype(w.dtype)
        z = jnp.dot(lhs, w, preferred_element_type=jnp.float32) + b
        # sigmoid(z) = 1 / (1 + exp(-z)): both transcendental steps on the EUP
        # (exp + reciprocal) instead of a VPU divide.
        e = jnp.exp(-z)
        if hasattr(pl, "reciprocal"):
            a = pl.reciprocal(1.0 + e, approx=approx_recip)
        else:  # very old jax fallback
            a = 1.0 / (1.0 + e)
    o_ref[...] = a.astype(o_ref.dtype)


# ----------------------------------------------------------------------------
# Forward wrapper
# ----------------------------------------------------------------------------
def kaiyang_forward_pallas(x, prepared: PreparedParams, *, batch_tile=None,
                           approx_recip=None):
    """Fused forward pass of the whole MLP in a single pallas_call.

    x:        (B, n_feature)
    prepared: output of prepare_params (padded/cast weights, cached at init).
    """
    B, nf = x.shape
    assert nf == prepared.n_feature
    out_dtype = x.dtype
    n_layers = prepared.n_layers
    flat_wb = prepared.flat_wb
    out_pad = prepared.widths[-1]
    max_width = max((prepared.n_feature,) + prepared.widths)

    if approx_recip is None:
        # Approximate EUP reciprocal only on the already-loose bf16 path.
        approx_recip = prepared.weight_dtype == jnp.bfloat16

    if batch_tile is None:
        # Bigger tiles for narrow layers amortize the ~0.35 us per-grid-step
        # bookkeeping; all of these fit comfortably in v7x's 64 MiB VMEM with
        # double-buffered activation tiles.
        if max_width <= 256:
            batch_tile = 2048
        elif max_width <= 512:
            batch_tile = 1024
        else:
            batch_tile = 512

    kernel = functools.partial(_mlp_kernel, n_layers=n_layers,
                               approx_recip=approx_recip)

    wb_bytes = sum(int(a.size) * a.dtype.itemsize for a in flat_wb)
    B8 = _round_up(B, _SUBLANE)
    num_tc = _num_tensorcores()

    # Small batch -> gridless single-shot call, everything VMEM-resident.
    # On a 2-TensorCore chip (v7x), prefer a >=2-tile parallel grid as soon as
    # there are >= 16 rows so both cores get work.
    use_grid = (B8 > batch_tile) or (num_tc >= 2 and B8 >= 2 * _SUBLANE)

    if not use_grid:
        act_bytes = 4 * B8 * max_width * 4      # x + out + intermediates + slack
        vmem_limit = int(min(64 << 20, max(32 << 20, 2 * (wb_bytes + act_bytes))))
        vmem = pl.BlockSpec(memory_space=pltpu.MemorySpace.VMEM)
        out_p = pl.pallas_call(
            kernel,
            out_shape=jax.ShapeDtypeStruct((B, out_pad), out_dtype),
            in_specs=[vmem] * (1 + len(flat_wb)),
            out_specs=vmem,
            compiler_params=pltpu.CompilerParams(vmem_limit_bytes=vmem_limit),
        )(x, *flat_wb)
    else:
        # Adaptive tile size: never round B up to a multiple of batch_tile;
        # <= 7 rows of padding waste per tile.
        n_tiles = _cdiv(B8, batch_tile)
        if num_tc >= 2 and B8 >= 2 * _SUBLANE:
            n_tiles = max(n_tiles, num_tc)      # keep both v7x TensorCores busy
        tb = _round_up(_cdiv(B8, n_tiles), _SUBLANE)
        n_tiles = _cdiv(B8, tb)
        B_pad = tb * n_tiles
        x_p = x if B_pad == B else jnp.zeros((B_pad, nf), x.dtype).at[:B].set(x)

        # Weights/biases: full blocks with constant index_maps -> stay resident
        # across grid steps.
        # TODO(synk): mark these pipeline_mode=pl.Buffered(1) (single buffer,
        # constant index_map) once that kwarg is reliably supported by the
        # top-level pallas_call pipeline on the deployed jax version.
        wb_specs = []
        for li in range(n_layers):
            wb_specs.append(
                pl.BlockSpec(flat_wb[2 * li].shape, lambda i: (0, 0)))
            wb_specs.append(
                pl.BlockSpec((1, prepared.widths[li]), lambda i: (0, 0)))

        act_bytes = 4 * tb * max_width * 4
        vmem_limit = int(min(64 << 20,
                             max(32 << 20, 2 * (2 * wb_bytes + act_bytes))))
        out_p = pl.pallas_call(
            kernel,
            out_shape=jax.ShapeDtypeStruct((B_pad, out_pad), out_dtype),
            grid=(n_tiles,),
            in_specs=[pl.BlockSpec((tb, nf), lambda i: (i, 0))] + wb_specs,
            out_specs=pl.BlockSpec((tb, out_pad), lambda i: (i, 0)),
            compiler_params=pltpu.CompilerParams(
                dimension_semantics=("parallel",),
                vmem_limit_bytes=vmem_limit,
            ),
        )(x_p, *flat_wb)

    # Slice away batch / lane padding only if any exists.
    if out_p.shape != (B, prepared.out_dim):
        out_p = out_p[:B, : prepared.out_dim]
    return out_p


def init_params(key, n_feature, neurons):
    """Deterministic init matching torch.nn.Linear's default U(-1/sqrt(fan_in), .)."""
    params = []
    dims = [n_feature] + list(neurons)
    for i in range(len(neurons)):
        fan_in, fan_out = dims[i], dims[i + 1]
        key, kw, kb = jax.random.split(key, 3)
        bound = 1.0 / math.sqrt(fan_in)
        # Stored as (in_features, out_features) == torch weight transposed.
        w = jax.random.uniform(kw, (fan_in, fan_out), jnp.float32, -bound, bound)
        b = jax.random.uniform(kb, (fan_out,), jnp.float32, -bound, bound)
        params.append((w, b))
    return params


# TODO(synk): datasplit/train/predict in the original module are host-side data
# loading / optimizer / softmax utilities, not part of the forward pass, and are
# intentionally not translated to Pallas.


if __name__ == "__main__":
    key = jax.random.PRNGKey(0)

    # Small shapes consistent with the module: MLP on (batch, n_feature) inputs.
    batch = 8
    n_feature = 32
    neurons = [64, 32, 16]

    key, kx = jax.random.split(key)
    x = jax.random.normal(kx, (batch, n_feature), dtype=jnp.float32)
    params = init_params(key, n_feature, neurons)

    # Pure-JAX reference (same math as the PyTorch forward).
    ref = x
    for w, b in params:
        ref = jax.nn.sigmoid(ref @ w + b)

    # 1) Exact f32 path (weights padded once at init, f32 matmul).
    prep_f32 = prepare_params(params, n_feature, weight_dtype=jnp.float32)
    out = jax.block_until_ready(kaiyang_forward_pallas(x, prep_f32))
    assert out.shape == (batch, neurons[-1])
    assert out.dtype == x.dtype
    assert jnp.allclose(out, ref, atol=1e-5, rtol=1e-5)

    # 2) Auto weight dtype (bf16 on v6e/v7x, f32 on v5e) -> looser tolerance
    #    only when bf16 actually got selected.
    prep_auto = prepare_params(params, n_feature)
    out2 = jax.block_until_ready(kaiyang_forward_pallas(x, prep_auto))
    tol = 2e-2 if prep_auto.weight_dtype == jnp.bfloat16 else 1e-5
    assert out2.shape == (batch, neurons[-1])
    assert jnp.allclose(out2, ref, atol=tol, rtol=tol)

    # 3) Batch-tiled grid path (adaptive tile, no round-up to batch_tile).
    key, kb = jax.random.split(key)
    xb = jax.random.normal(kb, (600, n_feature), dtype=jnp.float32)
    refb = xb
    for w, b in params:
        refb = jax.nn.sigmoid(refb @ w + b)
    outb = jax.block_until_ready(
        kaiyang_forward_pallas(xb, prep_f32, batch_tile=256))
    assert outb.shape == (600, neurons[-1])
    assert jnp.allclose(outb, refb, atol=1e-5, rtol=1e-5)

    print("KERNEL_OK")
</pallas_src>

<mosaic_0001>
module attributes {stable_mosaic.version = 11 : i64} {
  func.func @_mlp_kernel(%arg0: memref<8x32xf32, #tpu.memory_space<vmem>>, %arg1: memref<32x128xf32, #tpu.memory_space<vmem>>, %arg2: memref<1x128xf32, #tpu.memory_space<vmem>>, %arg3: memref<128x128xf32, #tpu.memory_space<vmem>>, %arg4: memref<1x128xf32, #tpu.memory_space<vmem>>, %arg5: memref<128x128xf32, #tpu.memory_space<vmem>>, %arg6: memref<1x128xf32, #tpu.memory_space<vmem>>, %arg7: memref<8x128xf32, #tpu.memory_space<vmem>>) attributes {dimension_semantics = [], scalar_prefetch = 0 : i64, scratch_operands = 0 : i64, tpu.core_type = #tpu.core_type<tc>} {
    %c0 = arith.constant 0 : index
    %c0_0 = arith.constant 0 : index
    %0 = vector.load %arg0[%c0, %c0_0] : memref<8x32xf32, #tpu.memory_space<vmem>>, vector<8x32xf32>
    %c0_1 = arith.constant 0 : index
    %c0_2 = arith.constant 0 : index
    %1 = vector.load %arg1[%c0_1, %c0_2] : memref<32x128xf32, #tpu.memory_space<vmem>>, vector<32x128xf32>
    %c0_3 = arith.constant 0 : index
    %c0_4 = arith.constant 0 : index
    %2 = vector.load %arg2[%c0_3, %c0_4] : memref<1x128xf32, #tpu.memory_space<vmem>>, vector<1x128xf32>
    %cst = arith.constant dense<0.000000e+00> : vector<8x128xf32>
    %3 = tpu.matmul %0, %1, %cst {dimension_numbers = #tpu.dot_dimension_numbers<[1], [0], [0], [1], [0, 0, 1, 1], [], []>} : vector<8x32xf32>, vector<32x128xf32>, vector<8x128xf32> -> vector<8x128xf32>
    %4 = vector.broadcast %2 : vector<1x128xf32> to vector<8x128xf32>
    %5 = arith.addf %3, %4 : vector<8x128xf32>
    %cst_5 = arith.constant 0.000000e+00 : f32
    %6 = vector.broadcast %cst_5 : f32 to vector<8x128xf32>
    %7 = arith.subf %6, %5 : vector<8x128xf32>
    %8 = math.exp %7 : vector<8x128xf32>
    %cst_6 = arith.constant 1.000000e+00 : f32
    %9 = vector.broadcast %cst_6 : f32 to vector<8x128xf32>
    %10 = arith.addf %9, %8 : vector<8x128xf32>
    %11 = tpu.reciprocal %10 : vector<8x128xf32> -> vector<8x128xf32>
    %c0_7 = arith.constant 0 : index
    %c0_8 = arith.constant 0 : index
    %12 = vector.load %arg3[%c0_7, %c0_8] : memref<128x128xf32, #tpu.memory_space<vmem>>, vector<128x128xf32>
    %c0_9 = arith.constant 0 : index
    %c0_10 = arith.constant 0 : index
    %13 = vector.load %arg4[%c0_9, %c0_10] : memref<1x128xf32, #tpu.memory_space<vmem>>, vector<1x128xf32>
    %cst_11 = arith.constant dense<0.000000e+00> : vector<8x128xf32>
    %14 = tpu.matmul %11, %12, %cst_11 {dimension_numbers = #tpu.dot_dimension_numbers<[1], [0], [0], [1], [0, 0, 1, 1], [], []>} : vector<8x128xf32>, vector<128x128xf32>, vector<8x128xf32> -> vector<8x128xf32>
    %15 = vector.broadcast %13 : vector<1x128xf32> to vector<8x128xf32>
    %16 = arith.addf %14, %15 : vector<8x128xf32>
    %cst_12 = arith.constant 0.000000e+00 : f32
    %17 = vector.broadcast %cst_12 : f32 to vector<8x128xf32>
    %18 = arith.subf %17, %16 : vector<8x128xf32>
    %19 = math.exp %18 : vector<8x128xf32>
    %cst_13 = arith.constant 1.000000e+00 : f32
    %20 = vector.broadcast %cst_13 : f32 to vector<8x128xf32>
    %21 = arith.addf %20, %19 : vector<8x128xf32>
    %22 = tpu.reciprocal %21 : vector<8x128xf32> -> vector<8x128xf32>
    %c0_14 = arith.constant 0 : index
    %c0_15 = arith.constant 0 : index
    %23 = vector.load %arg5[%c0_14, %c0_15] : memref<128x128xf32, #tpu.memory_space<vmem>>, vector<128x128xf32>
    %c0_16 = arith.constant 0 : index
    %c0_17 = arith.constant 0 : index
    %24 = vector.load %arg6[%c0_16, %c0_17] : memref<1x128xf32, #tpu.memory_space<vmem>>, vector<1x128xf32>
    %cst_18 = arith.constant dense<0.000000e+00> : vector<8x128xf32>
    %25 = tpu.matmul %22, %23, %cst_18 {dimension_numbers = #tpu.dot_dimension_numbers<[1], [0], [0], [1], [0, 0, 1, 1], [], []>} : vector<8x128xf32>, vector<128x128xf32>, vector<8x128xf32> -> vector<8x128xf32>
    %26 = vector.broadcast %24 : vector<1x128xf32> to vector<8x128xf32>
    %27 = arith.addf %25, %26 : vector<8x128xf32>
    %cst_19 = arith.constant 0.000000e+00 : f32
    %28 = vector.broadcast %cst_19 : f32 to vector<8x128xf32>
    %29 = arith.subf %28, %27 : vector<8x128xf32>
    %30 = math.exp %29 : vector<8x128xf32>
    %cst_20 = arith.constant 1.000000e+00 : f32
    %31 = vector.broadcast %cst_20 : f32 to vector<8x128xf32>
    %32 = arith.addf %31, %30 : vector<8x128xf32>
    %33 = tpu.reciprocal %32 : vector<8x128xf32> -> vector<8x128xf32>
    %c0_21 = arith.constant 0 : index
    %c0_22 = arith.constant 0 : index
    %34 = vector.load %arg7[%c0_21, %c0_22] : memref<8x128xf32, #tpu.memory_space<vmem>>, vector<8x128xf32>
    tpu.vector_store %arg7[%c0_21, %c0_22], %33 {strides = array<i32>} : memref<8x128xf32, #tpu.memory_space<vmem>>, vector<8x128xf32>,
    return
  }
}

</mosaic_0001>

<bundles_post_ra>
// kernel: tpu_custom_call.1
= control target key start
LH: loop header
LB: loop body
LE: loop exit
PB: predicated region body
PF: predicated region fallthrough
CT: control target
= control target key end

     0   :  { %12 = vsyncpa [#allocation3], 0  ;;  %s762_s0 = inlined_call_operand.hbm [shape: f32[8,32], index: 0, kind: input, shape index: {}]   ;;  %s763_s1 = inlined_call_operand.hbm [shape: f32[32,128], index: 1, kind: input, shape index: {}]   ;;  %s764_s2 = inlined_call_operand.vmem [shape: f32[1,128], index: 2, kind: input, shape index: {}]   ;;  %s765_s3 = inlined_call_operand.hbm [shape: f32[128,128], index: 3, kind: input, shape index: {}]   ;;  %s766_s4 = inlined_call_operand.vmem [shape: f32[1,128], index: 4, kind: input, shape index: {}]   ;;  %s767_s5 = inlined_call_operand.hbm [shape: f32[128,128], index: 5, kind: input, shape index: {}]   ;;  %s768_s6 = inlined_call_operand.vmem [shape: f32[1,128], index: 6, kind: input, shape index: {}]   ;;  %s769_s7 = inlined_call_operand.hbm [shape: f32[8,128], index: 7, kind: output, shape index: {}]  }
   0x1   :  { %13 = vsyncpa [#allocation6], 0 }
   0x2   :  { %14 = vsyncpa [#allocation9], 0 }
   0x3   :  { %15 = vsyncpa [#allocation4], 0  ;;  %s638_s24 = smov [#allocation5]  }
   0x4   :  { %s31_s25 = sshll.u32 %s638_s24, 4  ;;  %s32_s25 = int_to_ptr.vmem [resolvable:$true] %s31_s25 }
   0x5   :  { %s538_s26 = scalar_lea.vmem %s32_s25, 512  ;;  %p543_p1 = scmp.lt.s32.totalorder %s32_s25, %s32_s25 }
   0x6   :  { %p539_p0 = scmp.ne.s32.totalorder %s32_s25, %s538_s26  ;;  %p544_p2 = scmp.lt.s32.totalorder %s538_s26, %s538_s26 }
   0x8   :  { %p545_p3 = por %p544_p2, %p543_p1 }
   0xa   :  { %p546_p4 = pnand %p545_p3, %p539_p0 }
   0xc   :  { %549 = shalt.err (!%p546_p4)
}
   0xd   :  { %s639_s27 = smov 128   ;;  %s640_s28 = smov 8  }
   0xe   :  { %37 = dma.hbm_to_vmem [thread:$0]  %s763_s1, 512, %s32_s25, [#allocation6], %s639_s27, %s639_s27, %s640_s28  }
   0xf   :  { %s641_s8 = smov [#allocation2]   ;;  %s642_s10 = smov [#allocation7]  }
  0x10   :  { %s22_s9 = sshll.u32 %s641_s8, 4  ;;  %s45_s11 = sshll.u32 %s642_s10, 4  ;;  %s23_s9 = int_to_ptr.vmem [resolvable:$true] %s22_s9  ;;  %s46_s11 = int_to_ptr.vmem [resolvable:$true] %s45_s11 }
  0x11   :  { %s558_s12 = scalar_lea.vmem %s23_s9, 128  ;;  %p563_p6 = scmp.lt.s32.totalorder %s23_s9, %s23_s9 }
  0x12   :  { %p559_p5 = scmp.ne.s32.totalorder %s23_s9, %s558_s12  ;;  %p564_p7 = scmp.lt.s32.totalorder %s558_s12, %s558_s12 }
  0x14   :  { %p565_p8 = por %p564_p7, %p563_p6 }
  0x16   :  { %p566_p9 = pnand %p565_p8, %p559_p5 }
  0x18   :  { %569 = shalt.err (!%p566_p9)
}
  0x19   :  { %25 = dma.hbm_to_vmem [thread:$0]  %s762_s0, 128, %s23_s9, [#allocation3]  }
  0x1a   :  { %s578_s15 = scalar_lea.vmem %s46_s11, 2048  ;;  %p583_p11 = scmp.lt.s32.totalorder %s46_s11, %s46_s11 }
  0x1b   :  { %p579_p10 = scmp.ne.s32.totalorder %s46_s11, %s578_s15  ;;  %p584_p12 = scmp.lt.s32.totalorder %s578_s15, %s578_s15 }
  0x1d   :  { %p585_p13 = por %p584_p12, %p583_p11 }
  0x1f   :  { %p586_p0 = pnand %p585_p13, %p579_p10 }
  0x21   :  { %589 = shalt.err (!%p586_p0)
}
  0x22   :  { %51 = dma.hbm_to_vmem [thread:$0]  %s765_s3, 2048, %s46_s11, [#allocation6], %s639_s27, %s639_s27, %s640_s28  }
  0x23   :  { %s643_s17 = smov [#allocation8]  }
  0x24   :  { %s59_s18 = sshll.u32 %s643_s17, 4  ;;  %s60_s18 = int_to_ptr.vmem [resolvable:$true] %s59_s18 }
  0x25   :  { %s598_s19 = scalar_lea.vmem %s60_s18, 2048  ;;  %p603_p2 = scmp.lt.s32.totalorder %s60_s18, %s60_s18 }
  0x26   :  { %p599_p1 = scmp.ne.s32.totalorder %s60_s18, %s598_s19  ;;  %p604_p3 = scmp.lt.s32.totalorder %s598_s19, %s598_s19 }
  0x28   :  { %p605_p4 = por %p604_p3, %p603_p2 }
  0x2a   :  { %p606_p5 = pnand %p605_p4, %p599_p1 }
  0x2c   :  { %609 = shalt.err (!%p606_p5)
}
  0x2d   :  { %65 = dma.hbm_to_vmem [thread:$0]  %s767_s5, 2048, %s60_s18, [#allocation9], %s639_s27, %s639_s27, %s640_s28  }
  0x2e   :  { %630 = dma.done.wait [#allocation3], 128  }
  0x2f   :  { %631 = vsyncadd [#allocation3], 4294967168 }
  0x30   :  { %632 = dma.done.wait [#allocation6], 2560  }
  0x31   :  { %633 = vsyncadd [#allocation6], 4294964736 }
  0x32   :  { %634 = dma.done.wait [#allocation9], 2048  }
  0x33   :  { %635 = vsyncadd [#allocation9], 4294965248  ;;  %v644_v0 = vmov 0.0   ;;  %vm645_vm0 = vmmov 0   ;;  %v84_v1 = vld [vmem:[#allocation5 + $0x18] sm:$0xff]  ;;  %v83_v2 = vld [vmem:[#allocation5 + $0x10] sm:$0xff] }
  0x34   :  { %428 = vmatprep.subr.mxu0 %v644_v0  ;;  %436 = vmatprep.mubr.msk.f32.mxu0 %vm645_vm0, %v644_v0  ;;  %v82_v3 = vld [vmem:[#allocation5 + $0x8] sm:$0xff]  ;;  %v81_v4 = vld [vmem:[#allocation5] sm:$0xff]  ;;  %v80_v5 = vld [vmem:[#allocation2] sm:$0xff]  ;;  %vm92_vm1 = vcmask 261120  }
  0x35   :  { %439 = vmatprep.subr.mxu1 %v644_v0  ;;  %471 = vmatprep.mubr.msk.f32.mxu1 %vm645_vm0, %v644_v0  ;;  %v186_v6 = vld [vmem:[#allocation7 + $0x78] sm:$0xff]  ;;  %v185_v7 = vld [vmem:[#allocation7 + $0x70] sm:$0xff]  ;;  %v184_v8 = vld [vmem:[#allocation7 + $0x68] sm:$0xff] }
  0x36   :  { %429 = vmatpush3.msra.mxu0 %v84_v1  ;;  %440 = vmatpush3.msra.mxu1 %v186_v6  ;;  %v183_v9 = vld [vmem:[#allocation7 + $0x60] sm:$0xff]  ;;  %v182_v10 = vld [vmem:[#allocation7 + $0x58] sm:$0xff]  ;;  %v181_v11 = vld [vmem:[#allocation7 + $0x50] sm:$0xff] }
  0x37   :  { %430 = vmatprep.subr.mxu0 %v644_v0  ;;  %441 = vmatprep.subr.mxu1 %v644_v0  ;;  %v180_v12 = vld [vmem:[#allocation7 + $0x48] sm:$0xff]  ;;  %v179_v13 = vld [vmem:[#allocation7 + $0x40] sm:$0xff]  ;;  %v178_v14 = vld [vmem:[#allocation7 + $0x38] sm:$0xff] }
  0x38   :  { %431 = vmatpush3.msra.mxu0 %v83_v2  ;;  %442 = vmatpush3.msra.mxu1 %v185_v7  ;;  %v177_v15 = vld [vmem:[#allocation7 + $0x30] sm:$0xff]  ;;  %v176_v16 = vld [vmem:[#allocation7 + $0x28] sm:$0xff]  ;;  %v175_v17 = vld [vmem:[#allocation7 + $0x20] sm:$0xff] }
  0x39   :  { %432 = vmatprep.subr.mxu0 %v644_v0  ;;  %443 = vmatprep.subr.mxu1 %v644_v0  ;;  %v174_v18 = vld [vmem:[#allocation7 + $0x18] sm:$0xff]  ;;  %v173_v19 = vld [vmem:[#allocation7 + $0x10] sm:$0xff]  ;;  %v172_v20 = vld [vmem:[#allocation7 + $0x8] sm:$0xff] }
  0x3a   :  { %433 = vmatpush3.msra.mxu0 %v82_v3  ;;  %444 = vmatpush3.msra.mxu1 %v184_v8  ;;  %v171_v21 = vld [vmem:[#allocation7] sm:$0xff]  ;;  %v385_v22 = vld [vmem:[%s764_s2] ss:$0 sm:$0xff]  ;;  %v283_v32 = vld [vmem:[#allocation8 + $0x70] sm:$0xff] }
  0x3b   :  { %434 = vmatprep.subr.mxu0 %v644_v0  ;;  %445 = vmatprep.subr.mxu1 %v644_v0  ;;  %v284_v31 = vld [vmem:[#allocation8 + $0x78] sm:$0xff]  ;;  %v282_v33 = vld [vmem:[#allocation8 + $0x68] sm:$0xff]  ;;  %v281_v34 = vld [vmem:[#allocation8 + $0x60] sm:$0xff] }
  0x3c   :  { %435 = vmatpush3.msra.mxu0 %v81_v4  ;;  %446 = vmatpush3.msra.mxu1 %v183_v9  ;;  %v280_v35 = vld [vmem:[#allocation8 + $0x58] sm:$0xff]  ;;  %v279_v36 = vld [vmem:[#allocation8 + $0x50] sm:$0xff]  ;;  %v278_v37 = vld [vmem:[#allocation8 + $0x48] sm:$0xff] }
  0x3d   :  { %437 = vmatmul.mubr.msk.f32.vlgmr.msra.gmra.mxu0 %vm92_vm1, %v80_v5  ;;  %474 = vmatprep.subr.mxu0 %v644_v0  ;;  %v277_v38 = vld [vmem:[#allocation8 + $0x40] sm:$0xff]  ;;  %v276_v39 = vld [vmem:[#allocation8 + $0x38] sm:$0xff]  ;;  %v275_v40 = vld [vmem:[#allocation8 + $0x30] sm:$0xff] }
  0x3e   :  { %506 = vmatprep.mubr.msk.f32.mxu0 %vm645_vm0, %v644_v0  ;;  %447 = vmatprep.subr.mxu1 %v644_v0  ;;  %v274_v41 = vld [vmem:[#allocation8 + $0x28] sm:$0xff]  ;;  %v273_v42 = vld [vmem:[#allocation8 + $0x20] sm:$0xff]  ;;  %v272_v43 = vld [vmem:[#allocation8 + $0x18] sm:$0xff] }
  0x3f   :  { %448 = vmatpush3.msra.mxu1 %v182_v10  ;;  %475 = vmatpush3.msra.mxu0 %v284_v31  ;;  %v271_v44 = vld [vmem:[#allocation8 + $0x10] sm:$0xff]  ;;  %v270_v45 = vld [vmem:[#allocation8 + $0x8] sm:$0xff]  ;;  %v269_v46 = vld [vmem:[#allocation8] sm:$0xff] }
  0x40   :  { %449 = vmatprep.subr.mxu1 %v644_v0  ;;  %476 = vmatprep.subr.mxu0 %v644_v0  ;;  %v387_v47 = vld [vmem:[%s766_s4] ss:$0 sm:$0xff]  ;;  %s646_s4 = smov [#allocation10]  }
  0x41   :  { %450 = vmatpush3.msra.mxu1 %v181_v11  ;;  %477 = vmatpush3.msra.mxu0 %v283_v32  ;;  %v388_v56 = vld [vmem:[%s768_s6] ss:$0 sm:$0xff]  ;;  %s374_s24 = sshll.u32 %s646_s4, 4  ;;  %s375_s24 = int_to_ptr.vmem [resolvable:$true] %s374_s24 }
  0x42   :  { %451 = vmatprep.subr.mxu1 %v644_v0  ;;  %478 = vmatprep.subr.mxu0 %v644_v0  ;;  %s610_s25 = scalar_lea.vmem %s375_s24, 128  ;;  %p615_p7 = scmp.lt.s32.totalorder %s375_s24, %s375_s24 }
  0x43   :  { %452 = vmatpush3.msra.mxu1 %v180_v12  ;;  %479 = vmatpush3.msra.mxu0 %v282_v33  ;;  %p611_p6 = scmp.ne.s32.totalorder %s375_s24, %s610_s25  ;;  %p616_p8 = scmp.lt.s32.totalorder %s610_s25, %s610_s25 }
  0x44   :  { %453 = vmatprep.subr.mxu1 %v644_v0  ;;  %480 = vmatprep.subr.mxu0 %v644_v0 }
  0x45   :  { %454 = vmatpush3.msra.mxu1 %v179_v13  ;;  %481 = vmatpush3.msra.mxu0 %v281_v34  ;;  %p617_p9 = por %p616_p8, %p615_p7 }
  0x46   :  { %455 = vmatprep.subr.mxu1 %v644_v0  ;;  %482 = vmatprep.subr.mxu0 %v644_v0 }
  0x47   :  { %456 = vmatpush3.msra.mxu1 %v178_v14  ;;  %483 = vmatpush3.msra.mxu0 %v280_v35  ;;  %p618_p10 = pnand %p617_p9, %p611_p6 }
  0x48   :  { %457 = vmatprep.subr.mxu1 %v644_v0  ;;  %484 = vmatprep.subr.mxu0 %v644_v0 }
  0x49   :  { %458 = vmatpush3.msra.mxu1 %v177_v15  ;;  %485 = vmatpush3.msra.mxu0 %v279_v36 }
  0x4a   :  { %459 = vmatprep.subr.mxu1 %v644_v0  ;;  %486 = vmatprep.subr.mxu0 %v644_v0 }
  0x4b   :  { %460 = vmatpush3.msra.mxu1 %v176_v16  ;;  %487 = vmatpush3.msra.mxu0 %v278_v37 }
  0x4c   :  { %461 = vmatprep.subr.mxu1 %v644_v0  ;;  %488 = vmatprep.subr.mxu0 %v644_v0 }
  0x4d   :  { %462 = vmatpush3.msra.mxu1 %v175_v17  ;;  %489 = vmatpush3.msra.mxu0 %v277_v38 }
  0x4e   :  { %463 = vmatprep.subr.mxu1 %v644_v0  ;;  %490 = vmatprep.subr.mxu0 %v644_v0 }
  0x4f   :  { %464 = vmatpush3.msra.mxu1 %v174_v18  ;;  %491 = vmatpush3.msra.mxu0 %v276_v39 }
  0x50   :  { %465 = vmatprep.subr.mxu1 %v644_v0  ;;  %492 = vmatprep.subr.mxu0 %v644_v0 }
  0x51   :  { %466 = vmatpush3.msra.mxu1 %v173_v19  ;;  %493 = vmatpush3.msra.mxu0 %v275_v40 }
  0x52   :  { %467 = vmatprep.subr.mxu1 %v644_v0  ;;  %494 = vmatprep.subr.mxu0 %v644_v0 }
  0x53   :  { %468 = vmatpush3.msra.mxu1 %v172_v20  ;;  %495 = vmatpush3.msra.mxu0 %v274_v41 }
  0x54   :  { %469 = vmatprep.subr.mxu1 %v644_v0  ;;  %496 = vmatprep.subr.mxu0 %v644_v0 }
  0x55   :  { %470 = vmatpush3.msra.mxu1 %v171_v21  ;;  %497 = vmatpush3.msra.mxu0 %v273_v42 }
  0x56   :  { %498 = vmatprep.subr.mxu0 %v644_v0 }
  0x57   :  { %499 = vmatpush3.msra.mxu0 %v272_v43 }
  0x58   :  { %500 = vmatprep.subr.mxu0 %v644_v0 }
  0x59   :  { %501 = vmatpush3.msra.mxu0 %v271_v44 }
  0x5a   :  { %502 = vmatprep.subr.mxu0 %v644_v0 }
  0x5b   :  { %503 = vmatpush3.msra.mxu0 %v270_v45 }
  0x5c   :  { %504 = vmatprep.subr.mxu0 %v644_v0 }
  0x5d   :  { %505 = vmatpush3.msra.mxu0 %v269_v46 }
  0xfd   :  { %v162_v23 = vpop.f32.mrf.mxu0 }
  0xfe   :  { %v163_v24 = vadd.f32 %v385_v22, %v162_v23 }
  0xff   :  { %v438_v25 = vpop.f32.mrf.mxu0 }
 0x100   :  { %v166_v26 = vsub.f32 0.0, %v163_v24 }
 0x102   :  { %v167_v27 = vmul.f32 1.442695, %v166_v26 }
 0x104   :  { %518 = vpow2.f32 %v167_v27 }
 0x111   :  { %v519_v28 = vpop.eup %518 }
 0x112   :  { %v169_v29 = vadd.f32 1.0, %v519_v28 }
 0x114   :  { %520 = vrcp.f32 %v169_v29 }
 0x121   :  { %v521_v30 = vpop.eup %520 }
 0x122   :  { %472 = vmatmul.mubr.f32.vlgmr.msra.gmra.mxu1 %v521_v30 }
 0x1e2   :  { %v260_v48 = vpop.f32.mrf.mxu1 }
 0x1e3   :  { %v261_v49 = vadd.f32 %v387_v47, %v260_v48 }
 0x1e4   :  { %v473_v50 = vpop.f32.mrf.mxu1 }
 0x1e5   :  { %v264_v51 = vsub.f32 0.0, %v261_v49 }
 0x1e7   :  { %v265_v52 = vmul.f32 1.442695, %v264_v51 }
 0x1e9   :  { %522 = vpow2.f32 %v265_v52 }
 0x1f6   :  { %v523_v53 = vpop.eup %522 }
 0x1f7   :  { %v267_v54 = vadd.f32 1.0, %v523_v53 }
 0x1f9   :  { %524 = vrcp.f32 %v267_v54 }
 0x206   :  { %v525_v55 = vpop.eup %524 }
 0x207   :  { %507 = vmatmul.mubr.f32.vlgmr.msra.gmra.mxu0 %v525_v55 }
 0x2c7   :  { %v358_v57 = vpop.f32.mrf.mxu0 }
 0x2c8   :  { %v359_v58 = vadd.f32 %v388_v56, %v358_v57 }
 0x2c9   :  { %v508_v59 = vpop.f32.mrf.mxu0 }
 0x2ca   :  { %v362_v60 = vsub.f32 0.0, %v359_v58 }
 0x2cc   :  { %v363_v61 = vmul.f32 1.442695, %v362_v60 }
 0x2ce   :  { %526 = vpow2.f32 %v363_v61 }
 0x2db   :  { %v527_v62 = vpop.eup %526 }
 0x2dc   :  { %v365_v63 = vadd.f32 1.0, %v527_v62 }
 0x2de   :  { %528 = vrcp.f32 %v365_v63 }
 0x2eb   :  { %v529_v0 = vpop.eup %528 }
 0x2ec   :  { %367 = vst [vmem:[#allocation10] sm:$0xff] %v529_v0 }
 0x2ed   :  { %621 = shalt.err (!%p618_p10)
}
 0x2ee   :  { %377 = dma.vmem_to_hbm [thread:$0]  %s375_s24, 128, %s769_s7, [#allocation4]  }
 0x2ef   :  { %636 = dma.done.wait [#allocation4], 128  }
 0x2f0   :  { %637 = vsyncadd [#allocation4], 4294967168 }
 0x2f1   :  { %381 = vsyncpa [#allocation3], 1 }
 0x2f2   :  { %382 = vsyncpa [#allocation6], 1 }
 0x2f3   :  { %383 = vsyncpa [#allocation9], 1 }
 0x2f4   :  { %384 = vsyncpa [#allocation4], 1 }

</bundles_post_ra>
